<compile_context>
chip_gen: v7x
topology: tpu7x:2x2x1
jax: 0.10.0
libtpu: 0.0.40
codegen_flags: <defaults>
</compile_context>

<pallas_src>
import jax
import jax.numpy as jnp
from jax.experimental import pallas as pl
from jax.experimental.pallas import tpu as pltpu


def mlp_kernel(x_ref, w1_ref, b1_ref, w2_ref, b2_ref, o_ref):
    # x_ref : (TB, 784) f32      w1_ref: (784, 256) bf16   b1_ref: (1, 256) f32
    # w2_ref: (256, 128) bf16    b2_ref: (1, 128)  f32     o_ref : (TB, 128)
    x = x_ref[...].astype(jnp.bfloat16)                 # fused cast, no extra HBM pass
    h = jnp.dot(x, w1_ref[...], preferred_element_type=jnp.float32)
    h = jnp.maximum(h + b1_ref[...], 0.0)               # bias + ReLU in f32 (VPU)
    y = jnp.dot(h.astype(jnp.bfloat16), w2_ref[...],
                preferred_element_type=jnp.float32)
    o_ref[...] = (y + b2_ref[...]).astype(o_ref.dtype)


def _round_up(x, m):
    return ((x + m - 1) // m) * m


def _choose_block_b(B, max_block_b=1024):
    """Batch tile: small batches stay small (8-aligned); big batches get >=4
    grid steps (v7x megacore sharding) capped at 1024 rows (~8 MiB VMEM)."""
    if B <= 128:
        return _round_up(max(B, 1), 8)
    b128 = _round_up(B, 128)
    return min(max_block_b, max(128, _round_up(pl.cdiv(b128, 4), 128)))


def prepare_params(w1, b1, w2, b2, *, d_out_pad=128):
    """One-time weight prep (do NOT call per forward): bf16 cast + pad the 10
    output columns of w2/b2 to a lane-dense 128 (zeros are mathematically inert)."""
    d_in, H = w1.shape
    D_out = w2.shape[-1]
    w1b = jnp.asarray(w1, jnp.float32).astype(jnp.bfloat16)          # (784, 256)
    b1f = jnp.asarray(b1, jnp.float32).reshape(1, H)                 # (1, 256)
    w2p = jnp.zeros((H, d_out_pad), jnp.bfloat16).at[:, :D_out].set(
        jnp.asarray(w2, jnp.float32).astype(jnp.bfloat16))           # (256, 128)
    b2p = jnp.zeros((1, d_out_pad), jnp.float32).at[:, :D_out].set(
        jnp.asarray(b2, jnp.float32).reshape(1, D_out))              # (1, 128)
    return (w1b, b1f, w2p, b2p, D_out)


def mlp_forward(x, params, *, block_b=None, out_dtype=jnp.float32):
    """x: [B, 784] float32 (already flattened). Returns [B, 10] in out_dtype."""
    w1b, b1f, w2p, b2p, d_out = params
    B, d_in = x.shape
    H = w1b.shape[1]
    d_out_p = w2p.shape[1]
    assert w1b.shape[0] == d_in

    if block_b is None:
        block_b = _choose_block_b(B)
    block_b = max(8, _round_up(block_b, 8))
    Bp = _round_up(B, block_b)
    xp = x if Bp == B else jnp.pad(x, ((0, Bp - B), (0, 0)))

    grid = (Bp // block_b,)
    out = pl.pallas_call(
        mlp_kernel,
        out_shape=jax.ShapeDtypeStruct((Bp, d_out_p), out_dtype),
        grid_spec=pltpu.PrefetchScalarGridSpec(
            num_scalar_prefetch=0,
            grid=grid,
            in_specs=[
                # x tile: full last dim (784 == array dim, so (8,128) rule OK)
                pl.BlockSpec((block_b, d_in), lambda i: (i, 0)),
                pl.BlockSpec((d_in, H), lambda i: (0, 0)),      # w1 (resident)
                pl.BlockSpec((1, H), lambda i: (0, 0)),         # b1 (resident)
                pl.BlockSpec((H, d_out_p), lambda i: (0, 0)),   # w2 (resident, 128 cols)
                pl.BlockSpec((1, d_out_p), lambda i: (0, 0)),   # b2 (resident, 128 cols)
            ],
            out_specs=pl.BlockSpec((block_b, d_out_p), lambda i: (i, 0)),
        ),
        compiler_params=pltpu.CompilerParams(
            dimension_semantics=("parallel",),
        ),
    )(xp, w1b, b1f, w2p, b2p)

    # Under jit this slice fuses with the consumer; semantics match PyTorch.
    return out[:B, :d_out]


def init_params(key):
    """Deterministic init matching nn.Linear shapes (stored transposed)."""
    k1, k2, k3, k4 = jax.random.split(key, 4)
    lim1 = 1.0 / jnp.sqrt(784.0)
    lim2 = 1.0 / jnp.sqrt(256.0)
    w1 = jax.random.uniform(k1, (784, 256), jnp.float32, -lim1, lim1)
    b1 = jax.random.uniform(k2, (1, 256), jnp.float32, -lim1, lim1)
    w2 = jax.random.uniform(k3, (256, 10), jnp.float32, -lim2, lim2)
    b2 = jax.random.uniform(k4, (1, 10), jnp.float32, -lim2, lim2)
    return w1, b1, w2, b2


if __name__ == "__main__":
    key = jax.random.PRNGKey(0)
    kx, kp = jax.random.split(key)

    # Small MNIST-like batch, NCHW as in PyTorch.
    B = 8
    x_nchw = jax.random.normal(kx, (B, 1, 28, 28), jnp.float32)
    x_flat = x_nchw.reshape(B, -1)                      # x.view(x.size(0), -1)

    w1, b1, w2, b2 = init_params(kp)
    params = prepare_params(w1, b1, w2, b2)             # one-time weight prep

    fwd = jax.jit(lambda x: mlp_forward(x, params))
    out = jax.block_until_ready(fwd(x_flat))
    assert out.shape == (B, 10)

    # Reference with the same dtype policy (bf16 matmul operands, f32 accum).
    xb = x_flat.astype(jnp.bfloat16)
    w1b = w1.astype(jnp.bfloat16)
    w2b = w2.astype(jnp.bfloat16)
    h_ref = jnp.maximum(
        jnp.dot(xb, w1b, preferred_element_type=jnp.float32) + b1, 0.0)
    ref = jnp.dot(h_ref.astype(jnp.bfloat16), w2b,
                  preferred_element_type=jnp.float32) + b2
    assert jnp.allclose(out, ref, atol=1e-2, rtol=1e-2)

    # Loose sanity check against the pure-f32 reference (bf16 rounding slack).
    ref_f32 = jnp.maximum(x_flat @ w1 + b1, 0.0) @ w2 + b2
    assert jnp.allclose(out, ref_f32, atol=0.1, rtol=0.1)

    # Exercise the multi-step tiled path (grid > 1, no x padding) as well.
    B2 = 256
    x2 = jax.random.normal(jax.random.PRNGKey(1), (B2, 784), jnp.float32)
    out2 = jax.block_until_ready(jax.jit(lambda x: mlp_forward(x, params))(x2))
    ref2 = jnp.maximum(x2 @ w1 + b1, 0.0) @ w2 + b2
    assert out2.shape == (B2, 10)
    assert jnp.allclose(out2, ref2, atol=0.1, rtol=0.1)

    print("KERNEL_OK")
</pallas_src>

<mosaic_0001>
module attributes {stable_mosaic.version = 11 : i64} {
  func.func @mlp_kernel(%arg0: i32, %arg1: memref<8x784xf32, #tpu.memory_space<vmem>>, %arg2: memref<784x256xbf16, #tpu.memory_space<vmem>>, %arg3: memref<1x256xf32, #tpu.memory_space<vmem>>, %arg4: memref<256x128xbf16, #tpu.memory_space<vmem>>, %arg5: memref<1x128xf32, #tpu.memory_space<vmem>>, %arg6: memref<8x128xf32, #tpu.memory_space<vmem>>) attributes {dimension_semantics = [#tpu.dimension_semantics<parallel>], iteration_bounds = array<i64: 1>, scalar_prefetch = 0 : i64, scratch_operands = 0 : i64, tpu.core_type = #tpu.core_type<tc>, window_params = [{transform_indices = @transform_0, window_bounds = array<i64: 8, 784>}, {pipeline_mode = #tpu.pipeline_mode<synchronous>, transform_indices = @transform_1, window_bounds = array<i64: 784, 256>}, {pipeline_mode = #tpu.pipeline_mode<synchronous>, transform_indices = @transform_2, window_bounds = array<i64: 1, 256>}, {pipeline_mode = #tpu.pipeline_mode<synchronous>, transform_indices = @transform_3, window_bounds = array<i64: 256, 128>}, {pipeline_mode = #tpu.pipeline_mode<synchronous>, transform_indices = @transform_4, window_bounds = array<i64: 1, 128>}, {transform_indices = @transform_5, window_bounds = array<i64: 8, 128>}]} {
    %c0 = arith.constant 0 : index
    %c0_0 = arith.constant 0 : index
    %0 = vector.load %arg1[%c0, %c0_0] : memref<8x784xf32, #tpu.memory_space<vmem>>, vector<8x784xf32>
    %1 = arith.truncf %0 : vector<8x784xf32> to vector<8x784xbf16>
    %c0_1 = arith.constant 0 : index
    %c0_2 = arith.constant 0 : index
    %2 = vector.load %arg2[%c0_1, %c0_2] : memref<784x256xbf16, #tpu.memory_space<vmem>>, vector<784x256xbf16>
    %cst = arith.constant dense<0.000000e+00> : vector<8x256xf32>
    %3 = tpu.matmul %1, %2, %cst {dimension_numbers = #tpu.dot_dimension_numbers<[1], [0], [0], [1], [0, 0, 1, 1], [], []>} : vector<8x784xbf16>, vector<784x256xbf16>, vector<8x256xf32> -> vector<8x256xf32>
    %c0_3 = arith.constant 0 : index
    %c0_4 = arith.constant 0 : index
    %4 = vector.load %arg3[%c0_3, %c0_4] : memref<1x256xf32, #tpu.memory_space<vmem>>, vector<1x256xf32>
    %5 = vector.broadcast %4 : vector<1x256xf32> to vector<8x256xf32>
    %6 = arith.addf %3, %5 : vector<8x256xf32>
    %cst_5 = arith.constant 0.000000e+00 : f32
    %7 = vector.broadcast %cst_5 : f32 to vector<8x256xf32>
    %8 = arith.maximumf %6, %7 : vector<8x256xf32>
    %9 = arith.truncf %8 : vector<8x256xf32> to vector<8x256xbf16>
    %c0_6 = arith.constant 0 : index
    %c0_7 = arith.constant 0 : index
    %10 = vector.load %arg4[%c0_6, %c0_7] : memref<256x128xbf16, #tpu.memory_space<vmem>>, vector<256x128xbf16>
    %cst_8 = arith.constant dense<0.000000e+00> : vector<8x128xf32>
    %11 = tpu.matmul %9, %10, %cst_8 {dimension_numbers = #tpu.dot_dimension_numbers<[1], [0], [0], [1], [0, 0, 1, 1], [], []>} : vector<8x256xbf16>, vector<256x128xbf16>, vector<8x128xf32> -> vector<8x128xf32>
    %c0_9 = arith.constant 0 : index
    %c0_10 = arith.constant 0 : index
    %12 = vector.load %arg5[%c0_9, %c0_10] : memref<1x128xf32, #tpu.memory_space<vmem>>, vector<1x128xf32>
    %13 = vector.broadcast %12 : vector<1x128xf32> to vector<8x128xf32>
    %14 = arith.addf %11, %13 : vector<8x128xf32>
    %c0_11 = arith.constant 0 : index
    %c0_12 = arith.constant 0 : index
    %15 = vector.load %arg6[%c0_11, %c0_12] : memref<8x128xf32, #tpu.memory_space<vmem>>, vector<8x128xf32>
    tpu.vector_store %arg6[%c0_11, %c0_12], %14 {strides = array<i32>} : memref<8x128xf32, #tpu.memory_space<vmem>>, vector<8x128xf32>,
    return
  }
  func.func @transform_0(%arg0: i32) -> (i32, i32) {
    %c0_i32 = arith.constant 0 : i32
    %c0_i32_0 = arith.constant 0 : i32
    return %arg0, %c0_i32 : i32, i32
  }
  func.func @transform_1(%arg0: i32) -> (i32, i32) {
    %c0_i32 = arith.constant 0 : i32
    %c0_i32_0 = arith.constant 0 : i32
    %c0_i32_1 = arith.constant 0 : i32
    return %c0_i32, %c0_i32_0 : i32, i32
  }
  func.func @transform_2(%arg0: i32) -> (i32, i32) {
    %c0_i32 = arith.constant 0 : i32
    %c0_i32_0 = arith.constant 0 : i32
    %c0_i32_1 = arith.constant 0 : i32
    return %c0_i32, %c0_i32_0 : i32, i32
  }
  func.func @transform_3(%arg0: i32) -> (i32, i32) {
    %c0_i32 = arith.constant 0 : i32
    %c0_i32_0 = arith.constant 0 : i32
    %c0_i32_1 = arith.constant 0 : i32
    return %c0_i32, %c0_i32_0 : i32, i32
  }
  func.func @transform_4(%arg0: i32) -> (i32, i32) {
    %c0_i32 = arith.constant 0 : i32
    %c0_i32_0 = arith.constant 0 : i32
    %c0_i32_1 = arith.constant 0 : i32
    return %c0_i32, %c0_i32_0 : i32, i32
  }
  func.func @transform_5(%arg0: i32) -> (i32, i32) {
    %c0_i32 = arith.constant 0 : i32
    %c0_i32_0 = arith.constant 0 : i32
    return %arg0, %c0_i32 : i32, i32
  }
}

</mosaic_0001>

<bundles_post_ra>
// kernel: _lambda_.1
= control target key start
LH: loop header
LB: loop body
LE: loop exit
PB: predicated region body
PF: predicated region fallthrough
CT: control target
= control target key end

     0   :  { %s1748_s0 = inlined_call_operand.vmem [shape: f32[8,784], index: 0, kind: input, shape index: {}]   ;;  %s1749_s1 = inlined_call_operand.vmem [shape: bf16[784,256], index: 1, kind: input, shape index: {}]   ;;  %s1750_s2 = inlined_call_operand.vmem [shape: f32[1,256], index: 2, kind: input, shape index: {}]   ;;  %s1751_s3 = inlined_call_operand.vmem [shape: bf16[256,128], index: 3, kind: input, shape index: {}]   ;;  %s1752_s4 = inlined_call_operand.vmem [shape: f32[1,128], index: 4, kind: input, shape index: {}]   ;;  %s1753_s5 = inlined_call_operand.hbm [shape: f32[8,128], index: 5, kind: output, shape index: {}]  }
   0x1   :  { %v1148_v0 = vld [vmem:[%s1749_s1 + $0x104] ss:$8 sps:$4 sm:$0xff]   ;;  %v1150_v1 = vld [vmem:[%s1749_s1 + $0x100] ss:$8 sps:$4 sm:$0xff]   ;;  %v1151_v2 = vld [vmem:[%s1749_s1 + $0x114] ss:$8 sps:$4 sm:$0xff]  }
   0x2   :  { %681 = vmatprep.subr.bf16.mxu0 %v1148_v0  ;;  %v1153_v3 = vld [vmem:[%s1749_s1 + $0x110] ss:$8 sps:$4 sm:$0xff]   ;;  %v1154_v4 = vld [vmem:[%s1749_s1 + $0x124] ss:$8 sps:$4 sm:$0xff]   ;;  %v1156_v5 = vld [vmem:[%s1749_s1 + $0x120] ss:$8 sps:$4 sm:$0xff]  }
   0x3   :  { %682 = vmatpush1.bf16.msra.mxu0 %v1150_v1  ;;  %v1157_v6 = vld [vmem:[%s1749_s1 + $0x134] ss:$8 sps:$4 sm:$0xff]   ;;  %v1159_v7 = vld [vmem:[%s1749_s1 + $0x130] ss:$8 sps:$4 sm:$0xff]   ;;  %v1160_v8 = vld [vmem:[%s1749_s1 + $0x144] ss:$8 sps:$4 sm:$0xff]  }
   0x4   :  { %683 = vmatprep.subr.bf16.mxu0 %v1151_v2  ;;  %v1162_v9 = vld [vmem:[%s1749_s1 + $0x140] ss:$8 sps:$4 sm:$0xff]   ;;  %v1163_v10 = vld [vmem:[%s1749_s1 + $0x154] ss:$8 sps:$4 sm:$0xff]   ;;  %v1165_v11 = vld [vmem:[%s1749_s1 + $0x150] ss:$8 sps:$4 sm:$0xff]  }
   0x5   :  { %v1190_v12 = vld [vmem:[%s1749_s1 + $0x4] ss:$8 sps:$4 sm:$0xff]   ;;  %v1192_v13 = vld [vmem:[%s1749_s1] ss:$8 sps:$4 sm:$0xff]   ;;  %v1196_v15 = vld [vmem:[%s1749_s1 + $0x14] ss:$8 sps:$4 sm:$0xff]  }
   0x6   :  { %v1166_v14 = vld [vmem:[%s1749_s1 + $0x164] ss:$8 sps:$4 sm:$0xff]   ;;  %640 = vmatprep.subr.bf16.mxu1 %v1190_v12  ;;  %v1198_v16 = vld [vmem:[%s1749_s1 + $0x10] ss:$8 sps:$4 sm:$0xff]   ;;  %v1168_v17 = vld [vmem:[%s1749_s1 + $0x160] ss:$8 sps:$4 sm:$0xff]  }
   0x7   :  { %684 = vmatpush1.bf16.msra.mxu0 %v1153_v3  ;;  %641 = vmatpush1.bf16.msra.mxu1 %v1192_v13  ;;  %v1169_v18 = vld [vmem:[%s1749_s1 + $0x174] ss:$8 sps:$4 sm:$0xff]   ;;  %v1202_v19 = vld [vmem:[%s1749_s1 + $0x24] ss:$8 sps:$4 sm:$0xff]   ;;  %v1204_v21 = vld [vmem:[%s1749_s1 + $0x20] ss:$8 sps:$4 sm:$0xff]  }
   0x8   :  { %685 = vmatprep.subr.bf16.mxu0 %v1154_v4  ;;  %642 = vmatprep.subr.bf16.mxu1 %v1196_v15  ;;  %v25_v20 = vld [vmem:[%s1748_s0 + $0x18] sm:$0xff]  ;;  %v1172_v24 = vld [vmem:[%s1749_s1 + $0x184] ss:$8 sps:$4 sm:$0xff]   ;;  %v1174_v26 = vld [vmem:[%s1749_s1 + $0x180] ss:$8 sps:$4 sm:$0xff]  }
   0x9   :  { %v32_v22 = vpack.c.bf16 %v25_v20, %v25_v20  ;;  %v1171_v23 = vld [vmem:[%s1749_s1 + $0x170] ss:$8 sps:$4 sm:$0xff]   ;;  %v1208_v25 = vld [vmem:[%s1749_s1 + $0x34] ss:$8 sps:$4 sm:$0xff]   ;;  %v1214_v28 = vld [vmem:[%s1749_s1 + $0x44] ss:$8 sps:$4 sm:$0xff]  }
   0xa   :  { %v1210_v27 = vld [vmem:[%s1749_s1 + $0x30] ss:$8 sps:$4 sm:$0xff]   ;;  %v1175_v29 = vld [vmem:[%s1749_s1 + $0x194] ss:$8 sps:$4 sm:$0xff]   ;;  %v1216_v31 = vld [vmem:[%s1749_s1 + $0x40] ss:$8 sps:$4 sm:$0xff]  }
   0xb   :  { %686 = vmatpush1.bf16.msra.mxu0 %v1156_v5  ;;  %643 = vmatpush1.bf16.msra.mxu1 %v1198_v16  ;;  %v1177_v30 = vld [vmem:[%s1749_s1 + $0x190] ss:$8 sps:$4 sm:$0xff]   ;;  %v1220_v32 = vld [vmem:[%s1749_s1 + $0x54] ss:$8 sps:$4 sm:$0xff]   ;;  %v1178_v33 = vld [vmem:[%s1749_s1 + $0x1a4] ss:$8 sps:$4 sm:$0xff]  }
   0xc   :  { %687 = vmatprep.subr.bf16.mxu0 %v1157_v6  ;;  %644 = vmatprep.subr.bf16.mxu1 %v1202_v19  ;;  %v1180_v34 = vld [vmem:[%s1749_s1 + $0x1a0] ss:$8 sps:$4 sm:$0xff]   ;;  %v1222_v35 = vld [vmem:[%s1749_s1 + $0x50] ss:$8 sps:$4 sm:$0xff]   ;;  %v1226_v36 = vld [vmem:[%s1749_s1 + $0x64] ss:$8 sps:$4 sm:$0xff]  }
   0xd   :  { %713 = vmatprep.mubr.bf16.mxu0 %v32_v22  ;;  %v1181_v37 = vld [vmem:[%s1749_s1 + $0x1b4] ss:$8 sps:$4 sm:$0xff]   ;;  %v1183_v38 = vld [vmem:[%s1749_s1 + $0x1b0] ss:$8 sps:$4 sm:$0xff]   ;;  %v1228_v39 = vld [vmem:[%s1749_s1 + $0x60] ss:$8 sps:$4 sm:$0xff]  }
   0xe   :  { %v1232_v40 = vld [vmem:[%s1749_s1 + $0x74] ss:$8 sps:$4 sm:$0xff]   ;;  %v1184_v41 = vld [vmem:[%s1749_s1 + $0x1c4] ss:$8 sps:$4 sm:$0xff]   ;;  %v1186_v42 = vld [vmem:[%s1749_s1 + $0x1c0] ss:$8 sps:$4 sm:$0xff]  }
   0xf   :  { %688 = vmatpush1.bf16.msra.mxu0 %v1159_v7  ;;  %645 = vmatpush1.bf16.msra.mxu1 %v1204_v21  ;;  %v1234_v43 = vld [vmem:[%s1749_s1 + $0x70] ss:$8 sps:$4 sm:$0xff]   ;;  %v1238_v44 = vld [vmem:[%s1749_s1 + $0x84] ss:$8 sps:$4 sm:$0xff]   ;;  %v1187_v45 = vld [vmem:[%s1749_s1 + $0x1d4] ss:$8 sps:$4 sm:$0xff]  }
  0x10   :  { %689 = vmatprep.subr.bf16.mxu0 %v1160_v8  ;;  %646 = vmatprep.subr.bf16.mxu1 %v1208_v25  ;;  %v1189_v46 = vld [vmem:[%s1749_s1 + $0x1d0] ss:$8 sps:$4 sm:$0xff]   ;;  %v1240_v47 = vld [vmem:[%s1749_s1 + $0x80] ss:$8 sps:$4 sm:$0xff]   ;;  %v1244_v48 = vld [vmem:[%s1749_s1 + $0x94] ss:$8 sps:$4 sm:$0xff]  }
  0x11   :  { %v1193_v49 = vld [vmem:[%s1749_s1 + $0x1e4] ss:$8 sps:$4 sm:$0xff]   ;;  %v1195_v50 = vld [vmem:[%s1749_s1 + $0x1e0] ss:$8 sps:$4 sm:$0xff]   ;;  %v1246_v51 = vld [vmem:[%s1749_s1 + $0x90] ss:$8 sps:$4 sm:$0xff]  }
  0x12   :  { %v1250_v52 = vld [vmem:[%s1749_s1 + $0xa4] ss:$8 sps:$4 sm:$0xff]   ;;  %v1199_v53 = vld [vmem:[%s1749_s1 + $0x1f4] ss:$8 sps:$4 sm:$0xff]   ;;  %v1201_v54 = vld [vmem:[%s1749_s1 + $0x1f0] ss:$8 sps:$4 sm:$0xff]  }
  0x13   :  { %690 = vmatpush1.bf16.msra.mxu0 %v1162_v9  ;;  %647 = vmatpush1.bf16.msra.mxu1 %v1210_v27  ;;  %v24_v55 = vld [vmem:[%s1748_s0 + $0x10] sm:$0xff]  ;;  %v1252_v56 = vld [vmem:[%s1749_s1 + $0xa0] ss:$8 sps:$4 sm:$0xff]   ;;  %v1207_v58 = vld [vmem:[%s1749_s1 + $0x204] ss:$8 sps:$4 sm:$0xff]  }
  0x14   :  { %691 = vmatprep.subr.bf16.mxu0 %v1163_v10  ;;  %648 = vmatprep.subr.bf16.mxu1 %v1214_v28  ;;  %v1256_v57 = vld [vmem:[%s1749_s1 + $0xb4] ss:$8 sps:$4 sm:$0xff]   ;;  %v31_v59 = vpack.c.bf16 %v24_v55, %v24_v55  ;;  %v1258_v60 = vld [vmem:[%s1749_s1 + $0xb0] ss:$8 sps:$4 sm:$0xff]   ;;  %v23_v61 = vld [vmem:[%s1748_s0 + $0x8] sm:$0xff] }
  0x15   :  { %v1205_v62 = vld [vmem:[%s1749_s1 + $0x200] ss:$8 sps:$4 sm:$0xff]   ;;  %v1262_v63 = vld [vmem:[%s1749_s1 + $0xc4] ss:$8 sps:$4 sm:$0xff]   ;;  %v30_v0 = vpack.c.bf16 %v23_v61, %v23_v61  ;;  %v1213_v1 = vld [vmem:[%s1749_s1 + $0x214] ss:$8 sps:$4 sm:$0xff]  }
  0x16   :  { %v1264_v2 = vld [vmem:[%s1749_s1 + $0xc0] ss:$8 sps:$4 sm:$0xff]   ;;  %v1211_v4 = vld [vmem:[%s1749_s1 + $0x210] ss:$8 sps:$4 sm:$0xff]   ;;  %v1268_v5 = vld [vmem:[%s1749_s1 + $0xd4] ss:$8 sps:$4 sm:$0xff]  }
  0x17   :  { %692 = vmatpush1.bf16.msra.mxu0 %v1165_v11  ;;  %649 = vmatpush1.bf16.msra.mxu1 %v1216_v31  ;;  %v27_v3 = vld [vmem:[%s1748_s0 + $0x28] sm:$0xff]  ;;  %v1270_v9 = vld [vmem:[%s1749_s1 + $0xd0] ss:$8 sps:$4 sm:$0xff]   ;;  %v1225_v11 = vld [vmem:[%s1749_s1 + $0x234] ss:$8 sps:$4 sm:$0xff]  }
  0x18   :  { %693 = vmatprep.subr.bf16.mxu0 %v1166_v14  ;;  %650 = vmatprep.subr.bf16.mxu1 %v1220_v32  ;;  %v34_v6 = vpack.c.bf16 %v27_v3, %v27_v3  ;;  %v1219_v7 = vld [vmem:[%s1749_s1 + $0x224] ss:$8 sps:$4 sm:$0xff]   ;;  %v1217_v8 = vld [vmem:[%s1749_s1 + $0x220] ss:$8 sps:$4 sm:$0xff]   ;;  %v1223_v12 = vld [vmem:[%s1749_s1 + $0x230] ss:$8 sps:$4 sm:$0xff]  }
  0x19   :  { %672 = vmatprep.mubr.bf16.mxu1 %v30_v0  ;;  %v1274_v10 = vld [vmem:[%s1749_s1 + $0xe4] ss:$8 sps:$4 sm:$0xff]   ;;  %v1276_v13 = vld [vmem:[%s1749_s1 + $0xe0] ss:$8 sps:$4 sm:$0xff]   ;;  %v1280_v14 = vld [vmem:[%s1749_s1 + $0xf4] ss:$8 sps:$4 sm:$0xff]  }
  0x1a   :  { %v1231_v15 = vld [vmem:[%s1749_s1 + $0x244] ss:$8 sps:$4 sm:$0xff]   ;;  %v1282_v16 = vld [vmem:[%s1749_s1 + $0xf0] ss:$8 sps:$4 sm:$0xff]   ;;  %v1237_v20 = vld [vmem:[%s1749_s1 + $0x254] ss:$8 sps:$4 sm:$0xff]  }
  0x1b   :  { %694 = vmatpush1.bf16.msra.mxu0 %v1168_v17  ;;  %651 = vmatpush1.bf16.msra.mxu1 %v1222_v35  ;;  %v22_v17 = vld [vmem:[%s1748_s0] sm:$0xff] }
  0x1c   :  { %695 = vmatprep.subr.bf16.mxu0 %v1169_v18  ;;  %652 = vmatprep.subr.bf16.mxu1 %v1226_v36  ;;  %v1229_v18 = vld [vmem:[%s1749_s1 + $0x240] ss:$8 sps:$4 sm:$0xff]   ;;  %v1291_v19 = vld [vmem:[%s1749_s1 + $0x304] ss:$8 sps:$4 sm:$0xff]  }
  0x1f   :  { %696 = vmatpush1.bf16.msra.mxu0 %v1171_v23  ;;  %653 = vmatpush1.bf16.msra.mxu1 %v1228_v39 }
  0x20   :  { %697 = vmatprep.subr.bf16.mxu0 %v1172_v24  ;;  %654 = vmatprep.subr.bf16.mxu1 %v1232_v40 }
  0x23   :  { %698 = vmatpush1.bf16.msra.mxu0 %v1174_v26  ;;  %655 = vmatpush1.bf16.msra.mxu1 %v1234_v43 }
  0x24   :  { %699 = vmatprep.subr.bf16.mxu0 %v1175_v29  ;;  %656 = vmatprep.subr.bf16.mxu1 %v1238_v44 }
  0x27   :  { %700 = vmatpush1.bf16.msra.mxu0 %v1177_v30  ;;  %657 = vmatpush1.bf16.msra.mxu1 %v1240_v47 }
  0x28   :  { %701 = vmatprep.subr.bf16.mxu0 %v1178_v33  ;;  %658 = vmatprep.subr.bf16.mxu1 %v1244_v48 }
  0x2b   :  { %702 = vmatpush1.bf16.msra.mxu0 %v1180_v34  ;;  %659 = vmatpush1.bf16.msra.mxu1 %v1246_v51 }
  0x2c   :  { %703 = vmatprep.subr.bf16.mxu0 %v1181_v37  ;;  %660 = vmatprep.subr.bf16.mxu1 %v1250_v52 }
  0x2f   :  { %704 = vmatpush1.bf16.msra.mxu0 %v1183_v38  ;;  %661 = vmatpush1.bf16.msra.mxu1 %v1252_v56 }
  0x30   :  { %705 = vmatprep.subr.bf16.mxu0 %v1184_v41  ;;  %662 = vmatprep.subr.bf16.mxu1 %v1256_v57 }
  0x33   :  { %706 = vmatpush1.bf16.msra.mxu0 %v1186_v42  ;;  %663 = vmatpush1.bf16.msra.mxu1 %v1258_v60 }
  0x34   :  { %707 = vmatprep.subr.bf16.mxu0 %v1187_v45  ;;  %664 = vmatprep.subr.bf16.mxu1 %v1262_v63 }
  0x37   :  { %708 = vmatpush1.bf16.msra.mxu0 %v1189_v46  ;;  %665 = vmatpush1.bf16.msra.mxu1 %v1264_v2 }
  0x38   :  { %709 = vmatprep.subr.bf16.mxu0 %v1193_v49  ;;  %666 = vmatprep.subr.bf16.mxu1 %v1268_v5 }
  0x3b   :  { %710 = vmatpush1.bf16.msra.mxu0 %v1195_v50  ;;  %667 = vmatpush1.bf16.msra.mxu1 %v1270_v9 }
  0x3c   :  { %711 = vmatprep.subr.bf16.mxu0 %v1199_v53  ;;  %668 = vmatprep.subr.bf16.mxu1 %v1274_v10 }
  0x3f   :  { %712 = vmatpush1.bf16.msra.mxu0 %v1201_v54  ;;  %669 = vmatpush1.bf16.msra.mxu1 %v1276_v13 }
  0x40   :  { %722 = vmatprep.subr.bf16.mxu0 %v1207_v58  ;;  %670 = vmatprep.subr.bf16.mxu1 %v1280_v14 }
  0x42   :  { %714 = vmatmul.mubr.bf16.vlgmr.msra.gmra.mrb[0].mxu0 %v31_v59 }
  0x43   :  { %723 = vmatpush1.bf16.msra.mxu0 %v1205_v62  ;;  %754 = vmatprep.mubr.bf16.mxu0 %v34_v6 }
  0x44   :  { %724 = vmatprep.subr.bf16.mxu0 %v1213_v1 }
  0x47   :  { %725 = vmatpush1.bf16.msra.mxu0 %v1211_v4 }
  0x48   :  { %726 = vmatprep.subr.bf16.mxu0 %v1219_v7 }
  0x4b   :  { %727 = vmatpush1.bf16.msra.mxu0 %v1217_v8 }
  0x4c   :  { %728 = vmatprep.subr.bf16.mxu0 %v1225_v11 }
  0x4f   :  { %729 = vmatpush1.bf16.msra.mxu0 %v1223_v12 }
  0x50   :  { %730 = vmatprep.subr.bf16.mxu0 %v1231_v15 }
  0x51   :  { %10 = vsyncpa [#allocation3], 0  ;;  %v29_v21 = vpack.c.bf16 %v22_v17, %v22_v17  ;;  %671 = vmatpush1.bf16.msra.mxu1 %v1282_v16  ;;  %v1289_v22 = vld [vmem:[%s1749_s1 + $0x300] ss:$8 sps:$4 sm:$0xff]   ;;  %v1235_v23 = vld [vmem:[%s1749_s1 + $0x250] ss:$8 sps:$4 sm:$0xff]   ;;  %v136_v9 = vlaneseq }
  0x52   :  { %763 = vmatprep.subr.bf16.mxu1 %v1291_v19  ;;  %v1295_v24 = vld [vmem:[%s1751_s3 + $0x40] sm:$0xff]   ;;  %v1335_v26 = vmov 0   ;;  %v28_v27 = vld [vmem:[%s1748_s0 + $0x30] sm:$0xff]  ;;  %vm636_vm0 = vcmask 130048   ;;  %v1297_v33 = vld [vmem:[%s1751_s3 + $0x48] sm:$0xff]   ;;  %s1336_s10 = smov [#allocation2]  }
  0x53   :  { %731 = vmatpush1.bf16.msra.mxu0 %v1229_v18  ;;  %v1243_v25 = vld [vmem:[%s1749_s1 + $0x264] ss:$8 sps:$4 sm:$0xff]   ;;  %v1241_v28 = vld [vmem:[%s1749_s1 + $0x260] ss:$8 sps:$4 sm:$0xff]   ;;  %v1249_v29 = vld [vmem:[%s1749_s1 + $0x274] ss:$8 sps:$4 sm:$0xff]   ;;  %v35_v30 = vpack.c.bf16 %v28_v27, %v28_v27 }
  0x54   :  { %732 = vmatprep.subr.bf16.mxu0 %v1237_v20  ;;  %673 = vmatmul.mubr.bf16.vlgmr.msra.gmra.mrb[0].mxu1 %v29_v21  ;;  %v1296_v31 = vld [vmem:[%s1751_s3] sm:$0xff]   ;;  %v1247_v32 = vld [vmem:[%s1749_s1 + $0x270] ss:$8 sps:$4 sm:$0xff]   ;;  %v1298_v35 = vld [vmem:[%s1751_s3 + $0x8] sm:$0xff]   ;;  %v137_v10 = vshrl.u32 %v136_v9, 7  ;;  %s990_s11 = sshll.u32 %s1336_s10, 4  ;;  %s991_s11 = int_to_ptr.vmem [resolvable:$true] %s990_s11 }
  0x55   :  { %764 = vmatpush1.bf16.msra.mxu1 %v1289_v22  ;;  %795 = vmatprep.mubr.bf16.mxu1 %v1335_v26  ;;  %v1255_v34 = vld [vmem:[%s1749_s1 + $0x284] ss:$8 sps:$4 sm:$0xff]   ;;  %v1253_v36 = vld [vmem:[%s1749_s1 + $0x280] ss:$8 sps:$4 sm:$0xff]   ;;  %v1299_v37 = vld [vmem:[%s1751_s3 + $0x50] sm:$0xff]   ;;  %s1311_s12 = scalar_lea.vmem %s991_s11, 128  ;;  %p1316_p1 = scmp.lt.s32.totalorder %s991_s11, %s991_s11 }
  0x56   :  { %1114 = vmatprep.subr.bf16.mxu1 %v1295_v24  ;;  %v1261_v38 = vld [vmem:[%s1749_s1 + $0x294] ss:$8 sps:$4 sm:$0xff]   ;;  %v1259_v40 = vld [vmem:[%s1749_s1 + $0x290] ss:$8 sps:$4 sm:$0xff]   ;;  %v1267_v41 = vld [vmem:[%s1749_s1 + $0x2a4] ss:$8 sps:$4 sm:$0xff]   ;;  %p1312_p0 = scmp.ne.s32.totalorder %s991_s11, %s1311_s12  ;;  %p1317_p2 = scmp.lt.s32.totalorder %s1311_s12, %s1311_s12 }
  0x57   :  { %733 = vmatpush1.bf16.msra.mxu0 %v1235_v23  ;;  %v1300_v39 = vld [vmem:[%s1751_s3 + $0x10] sm:$0xff]   ;;  %v1265_v42 = vld [vmem:[%s1749_s1 + $0x2a0] ss:$8 sps:$4 sm:$0xff]   ;;  %v1279_v45 = vld [vmem:[%s1749_s1 + $0x2c4] ss:$8 sps:$4 sm:$0xff]   ;;  %v138_v11 = vsub.s32 0, %v137_v10 }
  0x58   :  { %734 = vmatprep.subr.bf16.mxu0 %v1243_v25  ;;  %v1273_v43 = vld [vmem:[%s1749_s1 + $0x2b4] ss:$8 sps:$4 sm:$0xff]   ;;  %v1271_v44 = vld [vmem:[%s1749_s1 + $0x2b0] ss:$8 sps:$4 sm:$0xff]   ;;  %v1277_v46 = vld [vmem:[%s1749_s1 + $0x2c0] ss:$8 sps:$4 sm:$0xff]   ;;  %p1318_p3 = por %p1317_p2, %p1316_p1 }
  0x59   :  { %v1285_v47 = vld [vmem:[%s1749_s1 + $0x2d4] ss:$8 sps:$4 sm:$0xff]   ;;  %v1283_v48 = vld [vmem:[%s1749_s1 + $0x2d0] ss:$8 sps:$4 sm:$0xff]   ;;  %v1288_v49 = vld [vmem:[%s1749_s1 + $0x2e4] ss:$8 sps:$4 sm:$0xff]  }
  0x5a   :  { %v1286_v50 = vld [vmem:[%s1749_s1 + $0x2e0] ss:$8 sps:$4 sm:$0xff]   ;;  %v1294_v51 = vld [vmem:[%s1749_s1 + $0x2f4] ss:$8 sps:$4 sm:$0xff]   ;;  %v1292_v52 = vld [vmem:[%s1749_s1 + $0x2f0] ss:$8 sps:$4 sm:$0xff]   ;;  %p1319_p4 = pnand %p1318_p3, %p1312_p0 }
  0x5b   :  { %735 = vmatpush1.bf16.msra.mxu0 %v1241_v28  ;;  %v26_v53 = vld [vmem:[%s1748_s0 + $0x20] sm:$0xff]  ;;  %v1301_v55 = vld [vmem:[%s1751_s3 + $0x58] sm:$0xff]   ;;  %v1305_v59 = vld [vmem:[%s1751_s3 + $0x68] sm:$0xff]   ;;  %v142_v13 = vsub.s32 1, %v137_v10 }
  0x5c   :  { %736 = vmatprep.subr.bf16.mxu0 %v1249_v29  ;;  %1096 = vmatmul.mubr.msk.bf16.vlgmr.msra.gmra.mrb[4].mxu1 %vm636_vm0, %v35_v30  ;;  %v33_v54 = vpack.c.bf16 %v26_v53, %v26_v53  ;;  %v1302_v56 = vld [vmem:[%s1751_s3 + $0x18] sm:$0xff]   ;;  %v1303_v57 = vld [vmem:[%s1751_s3 + $0x60] sm:$0xff]   ;;  %v1306_v60 = vld [vmem:[%s1751_s3 + $0x28] sm:$0xff]  }
  0x5d   :  { %1115 = vmatpush3.bf16.msra.mxu1 %v1296_v31  ;;  %v1304_v58 = vld [vmem:[%s1751_s3 + $0x20] sm:$0xff]   ;;  %v1307_v61 = vld [vmem:[%s1751_s3 + $0x70] sm:$0xff]   ;;  %v1309_v63 = vld [vmem:[%s1751_s3 + $0x78] sm:$0xff]  }
  0x5e   :  { %1116 = vmatprep.subr.bf16.mxu1 %v1297_v33  ;;  %v1308_v62 = vld [vmem:[%s1751_s3 + $0x30] sm:$0xff]   ;;  %v1310_v0 = vld [vmem:[%s1751_s3 + $0x38] sm:$0xff]   ;;  %v134_v12 = vld [vmem:[%s1750_s2] sm:$0x3] }
  0x5f   :  { %737 = vmatpush1.bf16.msra.mxu0 %v1247_v32  ;;  %v139_v14 = vrot.slane %v134_v12, %v138_v11  ;;  %v143_v15 = vrot.slane %v134_v12, %v142_v13  ;;  %v1097_v32 = vld [vmem:[%s1752_s4] ss:$0 sm:$0xff] }
  0x60   :  { %738 = vmatprep.subr.bf16.mxu0 %v1255_v34 }
  0x61   :  { %1117 = vmatpush3.bf16.msra.mxu1 %v1298_v35 }
  0x62   :  { %1118 = vmatprep.subr.bf16.mxu1 %v1299_v37 }
  0x63   :  { %739 = vmatpush1.bf16.msra.mxu0 %v1253_v36 }
  0x64   :  { %740 = vmatprep.subr.bf16.mxu0 %v1261_v38 }
  0x65   :  { %1119 = vmatpush3.bf16.msra.mxu1 %v1300_v39 }
  0x66   :  { %1120 = vmatprep.subr.bf16.mxu1 %v1301_v55 }
  0x67   :  { %741 = vmatpush1.bf16.msra.mxu0 %v1259_v40 }
  0x68   :  { %742 = vmatprep.subr.bf16.mxu0 %v1267_v41 }
  0x69   :  { %1121 = vmatpush3.bf16.msra.mxu1 %v1302_v56 }
  0x6a   :  { %1122 = vmatprep.subr.bf16.mxu1 %v1303_v57 }
  0x6b   :  { %743 = vmatpush1.bf16.msra.mxu0 %v1265_v42 }
  0x6c   :  { %744 = vmatprep.subr.bf16.mxu0 %v1273_v43 }
  0x6d   :  { %1123 = vmatpush3.bf16.msra.mxu1 %v1304_v58 }
  0x6e   :  { %1124 = vmatprep.subr.bf16.mxu1 %v1305_v59 }
  0x6f   :  { %745 = vmatpush1.bf16.msra.mxu0 %v1271_v44 }
  0x70   :  { %746 = vmatprep.subr.bf16.mxu0 %v1279_v45 }
  0x71   :  { %1125 = vmatpush3.bf16.msra.mxu1 %v1306_v60 }
  0x72   :  { %1126 = vmatprep.subr.bf16.mxu1 %v1307_v61 }
  0x73   :  { %747 = vmatpush1.bf16.msra.mxu0 %v1277_v46 }
  0x74   :  { %748 = vmatprep.subr.bf16.mxu0 %v1285_v47 }
  0x75   :  { %1127 = vmatpush3.bf16.msra.mxu1 %v1308_v62 }
  0x76   :  { %1128 = vmatprep.subr.bf16.mxu1 %v1309_v63 }
  0x77   :  { %749 = vmatpush1.bf16.msra.mxu0 %v1283_v48 }
  0x78   :  { %750 = vmatprep.subr.bf16.mxu0 %v1288_v49 }
  0x79   :  { %1129 = vmatpush3.bf16.msra.mxu1 %v1310_v0 }
  0x7b   :  { %751 = vmatpush1.bf16.msra.mxu0 %v1286_v50 }
  0x7c   :  { %752 = vmatprep.subr.bf16.mxu0 %v1294_v51 }
  0x7f   :  { %753 = vmatpush1.bf16.msra.mxu0 %v1292_v52 }
  0x82   :  { %755 = vmatmul.mubr.bf16.vlgmr.msra.gmra.mrb[0].mxu0 %v33_v54 }
 0x127   :  { %v674_v1 = vpop.f32.mrb[0].mxu1 }
 0x128   :  { %v676_v2 = vpop.f32.mrb[1].mxu1  ;;  %v675_v16 = vadd.f32 %v674_v1, %v139_v14 }
 0x129   :  { %v678_v3 = vpop.f32.mrb[2].mxu1  ;;  %v677_v17 = vadd.f32 %v676_v2, %v143_v15 }
 0x12a   :  { %v679_v4 = vpop.f32.mrb[3].mxu1 }
 0x12f   :  { %v797_v5 = vpop.f32.mrb[4].mxu1 }
 0x130   :  { %v799_v6 = vpop.f32.mrb[5].mxu1 }
 0x131   :  { %v801_v7 = vpop.f32.mrb[6].mxu1 }
 0x132   :  { %v802_v8 = vpop.f32.mrb[7].mxu1 }
 0x155   :  { %v756_v18 = vpop.f32.mrb[0].mxu0 }
 0x156   :  { %v1137_v19 = vadd.f32 %v756_v18, %v675_v16  ;;  %v758_v20 = vpop.f32.mrb[1].mxu0 }
 0x157   :  { %v1140_v21 = vadd.f32 %v758_v20, %v677_v17  ;;  %v760_v22 = vpop.f32.mrb[2].mxu0 }
 0x158   :  { %v1138_v23 = vadd.f32 %v1137_v19, %v797_v5  ;;  %v761_v24 = vpop.f32.mrb[3].mxu0 }
 0x159   :  { %v1141_v25 = vadd.f32 %v1140_v21, %v799_v6 }
 0x15a   :  { %v804_v26 = vmax.f32 %v1138_v23, 0.0 }
 0x15b   :  { %v805_v27 = vmax.f32 %v1141_v25, 0.0 }
 0x15c   :  { %v806_v29 = vpack.c.bf16 %v804_v26, %v804_v26 }
 0x15d   :  { %v807_v28 = vpack.c.bf16 %v805_v27, %v805_v27 }
 0x15f   :  { %975 = vmatprep.mubr.bf16.mxu1 %v807_v28 }
 0x160   :  { %976 = vmatmul.mubr.bf16.vlgmr.msra.gmra.mrb[8].mxu1 %v806_v29 }
 0x233   :  { %v1130_v30 = vpop.f32.mrb[8].mxu1 }
 0x234   :  { %v1131_v31 = vpop.f32.mrb[9].mxu1 }
 0x235   :  { %v1132_v33 = vadd.f32 %v1131_v31, %v1130_v30  ;;  %v1133_v34 = vpop.f32.mrb[10].mxu1 }
 0x236   :  { %v1134_v35 = vpop.f32.mrb[11].mxu1 }
 0x237   :  { %v978_v36 = vadd.f32 %v1132_v33, %v1097_v32 }
 0x239   :  { %983 = vst [vmem:[#allocation2] sm:$0xff] %v978_v36 }
 0x23a   :  { %1322 = shalt.err (!%p1319_p4)
}
 0x23b   :  { %s1323_s15 = scalar_lea.hbm %s1753_s5, 128 }
 0x23c   :  { %p1324_p5 = scmp.ne.s32.totalorder %s1753_s5, %s1323_s15  ;;  %p1327_p6 = scmp.lt.u32.totalorder %s1323_s15, %s1753_s5 }
 0x23e   :  { %p1329_p7 = pnand %p1327_p6, %p1324_p5 }
 0x240   :  { %1332 = shalt.err (!%p1329_p7)
}
 0x241   :  { %993 = dma.vmem_to_hbm [thread:$0]  %s991_s11, 128, %s1753_s5, [#allocation3]  }
 0x242   :  { %1333 = dma.done.wait [#allocation3], 128  }
 0x243   :  { %1334 = vsyncadd [#allocation3], 4294967168 }
 0x244   :  { %997 = vsyncpa [#allocation3], 1 }

</bundles_post_ra>
